<compile_context>
chip_gen: v6e
topology: v6e:2x2x1
jax: 0.10.0
libtpu: 0.0.40
codegen_flags: <defaults>
</compile_context>

<pallas_src>
import functools

import jax
import jax.numpy as jnp
import numpy as np
from jax.experimental import pallas as pl
from jax.experimental.pallas import tpu as pltpu


def _dft_matrices(d):
    """Real DFT matrices: cos[j,m] = cos(2*pi*j*m/d), nsin[j,m] = -sin(2*pi*j*m/d)."""
    j = np.arange(d)[:, None]
    m = np.arange(d)[None, :]
    ang = 2.0 * np.pi * j * m / d
    return (jnp.asarray(np.cos(ang), jnp.float32),
            jnp.asarray(-np.sin(ang), jnp.float32))


def _hrr_attn_kernel(x_ref, w_fwd_ref, w_out_ref, tri_ref, o_ref, carry_ref,
                     *, causal, dims, seq_tile):
    f32 = jnp.float32
    d = dims

    def dot(a, b):
        # Native MXU precision; accumulate in f32.
        return jax.lax.dot_general(a, b, (((1,), (0,)), ((), ())),
                                   preferred_element_type=f32)

    p = pl.program_id(1)   # phase axis (size 1 when causal, 2 when non-causal)
    t = pl.program_id(2)   # sequence-tile axis (innermost)

    # Reset the running frequency-domain sum at the start of each batch element.
    @pl.when(jnp.logical_and(p == 0, t == 0))
    def _():
        carry_ref[...] = jnp.zeros_like(carry_ref)

    x = x_ref[0].astype(f32)                             # (tS, D)

    # Fused projection + forward DFT. Columns are [qr | qi | kr | ki | vr | vi].
    xw = dot(x, w_fwd_ref[...])                          # (tS, 6D)
    qr, qi = xw[:, 0 * d:1 * d], xw[:, 1 * d:2 * d]
    kr, ki = xw[:, 2 * d:3 * d], xw[:, 3 * d:4 * d]
    vr, vi = xw[:, 4 * d:5 * d], xw[:, 5 * d:6 * d]

    # bind(k, v): elementwise complex product in the frequency domain.
    br = kr * vr - ki * vi
    bi = kr * vi + ki * vr

    def emit(sr, si):
        # unbind(s, q) = s * conj(q) in the frequency domain.
        ur = sr * qr + si * qi
        ui = si * qr - sr * qi
        # Fused inverse DFT + output projection (the 1/D scale is folded into w_out).
        out = dot(ur, w_out_ref[0]) + dot(ui, w_out_ref[1])
        o_ref[0] = out.astype(o_ref.dtype)

    if causal:
        # Intra-tile inclusive prefix sum (lower-triangular MXU matmul) plus the carry
        # from all previous tiles. The new carry is the last row of the inclusive sum.
        tri = tri_ref[...]                               # (tS, tS) lower-triangular ones
        sr = dot(tri, br) + carry_ref[0]                 # (tS, D) + (1, D) broadcast
        si = dot(tri, bi) + carry_ref[1]
        carry_ref[0] = sr[seq_tile - 1:seq_tile, :]
        carry_ref[1] = si[seq_tile - 1:seq_tile, :]
        emit(sr, si)
    else:
        # Non-causal: rank-1 global sum. Two-phase grid -- phase 0 accumulates the
        # full-sequence sum (O(S*D) on the VPU, no (S,S) work), phase 1 emits outputs.
        @pl.when(p == 0)
        def _():
            carry_ref[0] = carry_ref[0] + jnp.sum(br, axis=0, keepdims=True)
            carry_ref[1] = carry_ref[1] + jnp.sum(bi, axis=0, keepdims=True)
            o_ref[...] = jnp.zeros_like(o_ref)           # placeholder, overwritten in phase 1

        @pl.when(p == 1)
        def _():
            emit(jnp.broadcast_to(carry_ref[0], (seq_tile, d)),
                 jnp.broadcast_to(carry_ref[1], (seq_tile, d)))


def hrr_self_attention(x, wq, wk, wv, wo, *, causal=True, seq_tile=None):
    """x: (B, S, D); wq/wk/wv/wo: (D, D) in PyTorch nn.Linear (out, in) convention."""
    B, S, D = x.shape
    cos, nsin = _dft_matrices(D)
    wqT, wkT, wvT, woT = wq.T, wk.T, wv.T, wo.T          # (in, out)

    # Fuse the three projections with the forward DFT (one-time wrapper precompute).
    w_fwd = jnp.concatenate(
        [wqT @ cos, wqT @ nsin, wkT @ cos, wkT @ nsin, wvT @ cos, wvT @ nsin],
        axis=1).astype(jnp.float32)                      # (D, 6D)
    # Fuse the inverse DFT with the output projection (absorbs the 1/D scale).
    w_out = (jnp.stack([cos @ woT, nsin @ woT], axis=0) / D).astype(jnp.float32)  # (2, D, D)

    # Sequence tiling keeps per-step VMEM at O(tS*D) and the prefix-sum FLOPs at
    # O(S*tS*D) instead of O(S^2*D). For the toy demo S is small, so tS = S.
    if seq_tile is None:
        seq_tile = S
        for cand in (512, 256, 128):
            if S % cand == 0:
                seq_tile = cand
                break
    assert S % seq_tile == 0, "seq_tile must divide the sequence length"
    n_tiles = S // seq_tile
    phases = 1 if causal else 2

    # Causal lower-triangular tile, hoisted out of the kernel as a constant input.
    tri = jnp.tril(jnp.ones((seq_tile, seq_tile), jnp.float32))

    kernel = functools.partial(_hrr_attn_kernel, causal=causal, dims=D,
                               seq_tile=seq_tile)

    return pl.pallas_call(
        kernel,
        out_shape=jax.ShapeDtypeStruct((B, S, D), x.dtype),
        grid_spec=pltpu.PrefetchScalarGridSpec(
            num_scalar_prefetch=0,
            grid=(B, phases, n_tiles),
            in_specs=[
                pl.BlockSpec((1, seq_tile, D), lambda b, p, t: (b, t, 0)),    # x tile
                pl.BlockSpec((D, 6 * D), lambda b, p, t: (0, 0)),             # fused fwd weights
                pl.BlockSpec((2, D, D), lambda b, p, t: (0, 0, 0)),           # fused output weights
                pl.BlockSpec((seq_tile, seq_tile), lambda b, p, t: (0, 0)),   # causal tri tile
            ],
            out_specs=pl.BlockSpec((1, seq_tile, D), lambda b, p, t: (b, t, 0)),
            scratch_shapes=[pltpu.VMEM((2, 1, D), jnp.float32)],              # running freq-domain sum
        ),
        compiler_params=pltpu.CompilerParams(
            # Batch axis is independent -> megacore sharding on v7x; the phase and
            # sequence-tile axes carry the prefix-sum dependency -> "arbitrary".
            dimension_semantics=("parallel", "arbitrary", "arbitrary"),
            # Note: at large D / tS, set vmem_limit_bytes and shrink seq_tile (v5e: 16 MiB
            # default scoped VMEM; v7x: 64 MiB physical).
        ),
    )(x, w_fwd, w_out, tri)


# ----------------------------- pure-JAX reference -----------------------------
def _bind_ref(a, b):
    return jnp.fft.irfft(jnp.fft.rfft(a) * jnp.fft.rfft(b), n=a.shape[-1])


def _unbind_ref(s, b):
    return jnp.fft.irfft(jnp.fft.rfft(s) * jnp.conj(jnp.fft.rfft(b)), n=s.shape[-1])


def hrr_self_attention_ref(x, wq, wk, wv, wo, *, causal=True):
    q = x @ wq.T
    k = x @ wk.T
    v = x @ wv.T
    kv = _bind_ref(k, v)
    if causal:
        s = jnp.cumsum(kv, axis=-2)
    else:
        s = jnp.sum(kv, axis=-2, keepdims=True)
    a = _unbind_ref(s, q)
    return a @ wo.T


# ------------------------------------ main ------------------------------------
if __name__ == "__main__":
    B, S, D = 2, 8, 32
    key = jax.random.PRNGKey(0)
    kx, kq, kk, kv, ko = jax.random.split(key, 5)

    scale = 1.0 / np.sqrt(D)
    x = jax.random.normal(kx, (B, S, D), dtype=jnp.float32)
    wq = jax.random.normal(kq, (D, D), dtype=jnp.float32) * scale
    wk = jax.random.normal(kk, (D, D), dtype=jnp.float32) * scale
    wv = jax.random.normal(kv, (D, D), dtype=jnp.float32) * scale
    wo = jax.random.normal(ko, (D, D), dtype=jnp.float32) * scale

    for causal in (True, False):
        out = jax.block_until_ready(
            hrr_self_attention(x, wq, wk, wv, wo, causal=causal))
        ref = hrr_self_attention_ref(x, wq, wk, wv, wo, causal=causal)
        rel_err = float(jnp.max(jnp.abs(out - ref)) / (jnp.max(jnp.abs(ref)) + 1e-6))
        assert out.shape == (B, S, D)
        assert np.isfinite(np.asarray(out)).all()
        # Matmuls now run at native MXU precision (f32 accumulation via
        # preferred_element_type); tolerance reflects bf16-pass rounding rather than
        # HIGHEST-precision emulation.
        assert rel_err < 5e-2, f"relative error too large (causal={causal}): {rel_err}"

    print("KERNEL_OK")
</pallas_src>

<mosaic_0001>
module attributes {stable_mosaic.version = 11 : i64} {
  func.func @_hrr_attn_kernel(%arg0: i32, %arg1: i32, %arg2: i32, %arg3: memref<1x8x32xf32, #tpu.memory_space<vmem>>, %arg4: memref<32x192xf32, #tpu.memory_space<vmem>>, %arg5: memref<2x32x32xf32, #tpu.memory_space<vmem>>, %arg6: memref<8x8xf32, #tpu.memory_space<vmem>>, %arg7: memref<1x8x32xf32, #tpu.memory_space<vmem>>, %arg8: memref<2x1x32xf32, #tpu.memory_space<vmem>>) attributes {dimension_semantics = [#tpu.dimension_semantics<parallel>, #tpu.dimension_semantics<arbitrary>, #tpu.dimension_semantics<arbitrary>], iteration_bounds = array<i64: 2, 1, 1>, scalar_prefetch = 0 : i64, scratch_operands = 1 : i64, tpu.core_type = #tpu.core_type<tc>, window_params = [{transform_indices = @transform_0, window_bounds = array<i64: 1, 8, 32>}, {pipeline_mode = #tpu.pipeline_mode<synchronous>, transform_indices = @transform_1, window_bounds = array<i64: 32, 192>}, {pipeline_mode = #tpu.pipeline_mode<synchronous>, transform_indices = @transform_2, window_bounds = array<i64: 2, 32, 32>}, {pipeline_mode = #tpu.pipeline_mode<synchronous>, transform_indices = @transform_3, window_bounds = array<i64: 8, 8>}, {transform_indices = @transform_4, window_bounds = array<i64: 1, 8, 32>}]} {
    %c0_i32 = arith.constant 0 : i32
    %0 = arith.cmpi eq, %arg1, %c0_i32 : i32
    %c0_i32_0 = arith.constant 0 : i32
    %1 = arith.cmpi eq, %arg2, %c0_i32_0 : i32
    %2 = arith.andi %0, %1 : i1
    %3 = arith.extui %2 : i1 to i32
    %c0_i32_1 = arith.constant 0 : i32
    %4 = arith.cmpi ne, %3, %c0_i32_1 : i32
    scf.if %4 {
      %cst_32 = arith.constant 0.000000e+00 : f32
      %56 = vector.broadcast %cst_32 : f32 to vector<2x1x32xf32>
      %c0_33 = arith.constant 0 : index
      %c0_34 = arith.constant 0 : index
      %c0_35 = arith.constant 0 : index
      %57 = vector.load %arg8[%c0_33, %c0_34, %c0_35] : memref<2x1x32xf32, #tpu.memory_space<vmem>>, vector<2x1x32xf32>
      tpu.vector_store %arg8[%c0_33, %c0_34, %c0_35], %56 {strides = array<i32>} : memref<2x1x32xf32, #tpu.memory_space<vmem>>, vector<2x1x32xf32>,
    } else {
    }
    %c0 = arith.constant 0 : index
    %c0_2 = arith.constant 0 : index
    %c0_3 = arith.constant 0 : index
    %5 = vector.load %arg3[%c0, %c0_2, %c0_3] : memref<1x8x32xf32, #tpu.memory_space<vmem>>, vector<1x8x32xf32>
    %6 = vector.shape_cast %5 : vector<1x8x32xf32> to vector<8x32xf32>
    %c0_4 = arith.constant 0 : index
    %c0_5 = arith.constant 0 : index
    %7 = vector.load %arg4[%c0_4, %c0_5] : memref<32x192xf32, #tpu.memory_space<vmem>>, vector<32x192xf32>
    %cst = arith.constant dense<0.000000e+00> : vector<8x192xf32>
    %8 = tpu.matmul %6, %7, %cst {dimension_numbers = #tpu.dot_dimension_numbers<[1], [0], [0], [1], [0, 0, 1, 1], [], []>} : vector<8x32xf32>, vector<32x192xf32>, vector<8x192xf32> -> vector<8x192xf32>
    %9 = vector.extract_strided_slice %8 {offsets = [0, 0], sizes = [8, 32], strides = [1, 1]} : vector<8x192xf32> to vector<8x32xf32>
    %10 = vector.extract_strided_slice %8 {offsets = [0, 32], sizes = [8, 32], strides = [1, 1]} : vector<8x192xf32> to vector<8x32xf32>
    %11 = vector.extract_strided_slice %8 {offsets = [0, 64], sizes = [8, 32], strides = [1, 1]} : vector<8x192xf32> to vector<8x32xf32>
    %12 = vector.extract_strided_slice %8 {offsets = [0, 96], sizes = [8, 32], strides = [1, 1]} : vector<8x192xf32> to vector<8x32xf32>
    %13 = vector.extract_strided_slice %8 {offsets = [0, 128], sizes = [8, 32], strides = [1, 1]} : vector<8x192xf32> to vector<8x32xf32>
    %14 = vector.extract_strided_slice %8 {offsets = [0, 160], sizes = [8, 32], strides = [1, 1]} : vector<8x192xf32> to vector<8x32xf32>
    %15 = arith.mulf %11, %13 : vector<8x32xf32>
    %16 = arith.mulf %12, %14 : vector<8x32xf32>
    %17 = arith.subf %15, %16 : vector<8x32xf32>
    %18 = arith.mulf %11, %14 : vector<8x32xf32>
    %19 = arith.mulf %12, %13 : vector<8x32xf32>
    %20 = arith.addf %18, %19 : vector<8x32xf32>
    %c0_6 = arith.constant 0 : index
    %c0_7 = arith.constant 0 : index
    %21 = vector.load %arg6[%c0_6, %c0_7] : memref<8x8xf32, #tpu.memory_space<vmem>>, vector<8x8xf32>
    %cst_8 = arith.constant dense<0.000000e+00> : vector<8x32xf32>
    %22 = tpu.matmul %21, %17, %cst_8 {dimension_numbers = #tpu.dot_dimension_numbers<[1], [0], [0], [1], [0, 0, 1, 1], [], []>} : vector<8x8xf32>, vector<8x32xf32>, vector<8x32xf32> -> vector<8x32xf32>
    %c0_9 = arith.constant 0 : index
    %c0_10 = arith.constant 0 : index
    %c0_11 = arith.constant 0 : index
    %23 = vector.load %arg8[%c0_9, %c0_10, %c0_11] : memref<2x1x32xf32, #tpu.memory_space<vmem>>, vector<1x1x32xf32>
    %24 = vector.shape_cast %23 : vector<1x1x32xf32> to vector<1x32xf32>
    %25 = vector.broadcast %24 : vector<1x32xf32> to vector<8x32xf32>
    %26 = arith.addf %22, %25 : vector<8x32xf32>
    %cst_12 = arith.constant dense<0.000000e+00> : vector<8x32xf32>
    %27 = tpu.matmul %21, %20, %cst_12 {dimension_numbers = #tpu.dot_dimension_numbers<[1], [0], [0], [1], [0, 0, 1, 1], [], []>} : vector<8x8xf32>, vector<8x32xf32>, vector<8x32xf32> -> vector<8x32xf32>
    %c1 = arith.constant 1 : index
    %c0_13 = arith.constant 0 : index
    %c0_14 = arith.constant 0 : index
    %28 = vector.load %arg8[%c1, %c0_13, %c0_14] : memref<2x1x32xf32, #tpu.memory_space<vmem>>, vector<1x1x32xf32>
    %29 = vector.shape_cast %28 : vector<1x1x32xf32> to vector<1x32xf32>
    %30 = vector.broadcast %29 : vector<1x32xf32> to vector<8x32xf32>
    %31 = arith.addf %27, %30 : vector<8x32xf32>
    %32 = vector.extract_strided_slice %26 {offsets = [7, 0], sizes = [1, 32], strides = [1, 1]} : vector<8x32xf32> to vector<1x32xf32>
    %c0_15 = arith.constant 0 : index
    %c0_16 = arith.constant 0 : index
    %c0_17 = arith.constant 0 : index
    %33 = vector.load %arg8[%c0_15, %c0_16, %c0_17] : memref<2x1x32xf32, #tpu.memory_space<vmem>>, vector<1x1x32xf32>
    %34 = vector.shape_cast %33 : vector<1x1x32xf32> to vector<1x32xf32>
    %35 = vector.shape_cast %32 : vector<1x32xf32> to vector<1x1x32xf32>
    tpu.vector_store %arg8[%c0_15, %c0_16, %c0_17], %35 {strides = array<i32>} : memref<2x1x32xf32, #tpu.memory_space<vmem>>, vector<1x1x32xf32>,
    %36 = vector.extract_strided_slice %31 {offsets = [7, 0], sizes = [1, 32], strides = [1, 1]} : vector<8x32xf32> to vector<1x32xf32>
    %c1_18 = arith.constant 1 : index
    %c0_19 = arith.constant 0 : index
    %c0_20 = arith.constant 0 : index
    %37 = vector.load %arg8[%c1_18, %c0_19, %c0_20] : memref<2x1x32xf32, #tpu.memory_space<vmem>>, vector<1x1x32xf32>
    %38 = vector.shape_cast %37 : vector<1x1x32xf32> to vector<1x32xf32>
    %39 = vector.shape_cast %36 : vector<1x32xf32> to vector<1x1x32xf32>
    tpu.vector_store %arg8[%c1_18, %c0_19, %c0_20], %39 {strides = array<i32>} : memref<2x1x32xf32, #tpu.memory_space<vmem>>, vector<1x1x32xf32>,
    %40 = arith.mulf %26, %9 : vector<8x32xf32>
    %41 = arith.mulf %31, %10 : vector<8x32xf32>
    %42 = arith.addf %40, %41 : vector<8x32xf32>
    %43 = arith.mulf %31, %9 : vector<8x32xf32>
    %44 = arith.mulf %26, %10 : vector<8x32xf32>
    %45 = arith.subf %43, %44 : vector<8x32xf32>
    %c0_21 = arith.constant 0 : index
    %c0_22 = arith.constant 0 : index
    %c0_23 = arith.constant 0 : index
    %46 = vector.load %arg5[%c0_21, %c0_22, %c0_23] : memref<2x32x32xf32, #tpu.memory_space<vmem>>, vector<1x32x32xf32>
    %47 = vector.shape_cast %46 : vector<1x32x32xf32> to vector<32x32xf32>
    %cst_24 = arith.constant dense<0.000000e+00> : vector<8x32xf32>
    %48 = tpu.matmul %42, %47, %cst_24 {dimension_numbers = #tpu.dot_dimension_numbers<[1], [0], [0], [1], [0, 0, 1, 1], [], []>} : vector<8x32xf32>, vector<32x32xf32>, vector<8x32xf32> -> vector<8x32xf32>
    %c1_25 = arith.constant 1 : index
    %c0_26 = arith.constant 0 : index
    %c0_27 = arith.constant 0 : index
    %49 = vector.load %arg5[%c1_25, %c0_26, %c0_27] : memref<2x32x32xf32, #tpu.memory_space<vmem>>, vector<1x32x32xf32>
    %50 = vector.shape_cast %49 : vector<1x32x32xf32> to vector<32x32xf32>
    %cst_28 = arith.constant dense<0.000000e+00> : vector<8x32xf32>
    %51 = tpu.matmul %45, %50, %cst_28 {dimension_numbers = #tpu.dot_dimension_numbers<[1], [0], [0], [1], [0, 0, 1, 1], [], []>} : vector<8x32xf32>, vector<32x32xf32>, vector<8x32xf32> -> vector<8x32xf32>
    %52 = arith.addf %48, %51 : vector<8x32xf32>
    %c0_29 = arith.constant 0 : index
    %c0_30 = arith.constant 0 : index
    %c0_31 = arith.constant 0 : index
    %53 = vector.load %arg7[%c0_29, %c0_30, %c0_31] : memref<1x8x32xf32, #tpu.memory_space<vmem>>, vector<1x8x32xf32>
    %54 = vector.shape_cast %53 : vector<1x8x32xf32> to vector<8x32xf32>
    %55 = vector.shape_cast %52 : vector<8x32xf32> to vector<1x8x32xf32>
    tpu.vector_store %arg7[%c0_29, %c0_30, %c0_31], %55 {strides = array<i32>} : memref<1x8x32xf32, #tpu.memory_space<vmem>>, vector<1x8x32xf32>,
    return
  }
  func.func @transform_0(%arg0: i32, %arg1: i32, %arg2: i32) -> (i32, i32, i32) {
    %c0_i32 = arith.constant 0 : i32
    %c0_i32_0 = arith.constant 0 : i32
    return %arg0, %arg2, %c0_i32 : i32, i32, i32
  }
  func.func @transform_1(%arg0: i32, %arg1: i32, %arg2: i32) -> (i32, i32) {
    %c0_i32 = arith.constant 0 : i32
    %c0_i32_0 = arith.constant 0 : i32
    %c0_i32_1 = arith.constant 0 : i32
    return %c0_i32, %c0_i32_0 : i32, i32
  }
  func.func @transform_2(%arg0: i32, %arg1: i32, %arg2: i32) -> (i32, i32, i32) {
    %c0_i32 = arith.constant 0 : i32
    %c0_i32_0 = arith.constant 0 : i32
    %c0_i32_1 = arith.constant 0 : i32
    %c0_i32_2 = arith.constant 0 : i32
    return %c0_i32, %c0_i32_0, %c0_i32_1 : i32, i32, i32
  }
  func.func @transform_3(%arg0: i32, %arg1: i32, %arg2: i32) -> (i32, i32) {
    %c0_i32 = arith.constant 0 : i32
    %c0_i32_0 = arith.constant 0 : i32
    %c0_i32_1 = arith.constant 0 : i32
    return %c0_i32, %c0_i32_0 : i32, i32
  }
  func.func @transform_4(%arg0: i32, %arg1: i32, %arg2: i32) -> (i32, i32, i32) {
    %c0_i32 = arith.constant 0 : i32
    %c0_i32_0 = arith.constant 0 : i32
    return %arg0, %arg2, %c0_i32 : i32, i32, i32
  }
}

</mosaic_0001>

<bundles_post_ra>
// kernel: tpu_custom_call.1
= control target key start
LH: loop header
LB: loop body
LE: loop exit
PB: predicated region body
PF: predicated region fallthrough
CT: control target
= control target key end

     0   :  { %s1507_s0 = inlined_call_operand.hbm [shape: f32[2,8,32], index: 0, kind: input, shape index: {}]   ;;  %s1508_s1 = inlined_call_operand.hbm [shape: f32[32,192], index: 1, kind: input, shape index: {}]   ;;  %s1509_s2 = inlined_call_operand.hbm [shape: f32[2,32,32], index: 2, kind: input, shape index: {}]   ;;  %s1510_s3 = inlined_call_operand.hbm [shape: f32[8,8], index: 3, kind: input, shape index: {}]   ;;  %s1511_s4 = inlined_call_operand.hbm [shape: f32[2,8,32], index: 4, kind: output, shape index: {}]  }
   0x1   :  { %1515 = sst [smem:[#allocation16_spill]] %s1508_s1 }
   0x2   :  { %9 = vsyncpa [#allocation4], 0 }
   0x3   :  { %11 = vsyncpa [#allocation4 + $0x1], 0 }
   0x4   :  { %12 = vsyncpa [#allocation7], 0 }
   0x5   :  { %13 = vsyncpa [#allocation10], 0 }
   0x6   :  { %14 = vsyncpa [#allocation5], 0 }
   0x7   :  { %16 = vsyncpa [#allocation5 + $0x1], 0  ;;  %s1268_s15 = smov 0   ;;  %s1270_s16 = smov 0  }
   0x8   :  { %s1272_s17 = smov 0   ;;  %s1274_s18 = smov 0  }
   0x9   :  { %s1276_s19 = smov 0   ;;  %s1278_s20 = smov 0  }
   0xa LB: > { %s859_s21 = sadd.s32 4294967295, %s1227_s20   ;;  %s860_s22 = sadd.s32 4294967294, %s1227_s20   ;;  %s1227_s20 = sphi %s1278_s20, %s22_s20   ;;  %s1223_s19 = sphi %s1276_s19, %s1534_s19   ;;  %s1219_s18 = sphi %s1274_s18, %s1533_s18   ;;  %s1215_s17 = sphi %s1272_s17, %s1532_s17   ;;  %s1211_s16 = sphi %s1270_s16, %s1531_s16   ;;  %s1207_s15 = sphi %s1268_s15, %s1530_s15  }
   0xb   : > { %p63_p0 = scmp.ne.s32.totalorder %s1211_s16, %s1207_s15  ;;  %p1302_p1 = scmp.eq.s32.totalorder %s859_s21, 0 }
   0xc   : > { %p1306_p2 = scmp.eq.s32.totalorder %s859_s21, 1  ;;  %p158_p3 = scmp.eq.s32.totalorder %s860_s22, 1 }
   0xd   : > { %s1516_s23 = scalar_select %p1302_p1, 1, 0 }
   0xe   : > { %p1312_p4 = por %p1302_p1, %p63_p0  ;;  %p861_p5 = scmp.ge.s32.totalorder %s1227_s20, 1 }
   0xf   : > { %p1317_p6 = por %p158_p3, %p63_p0  ;;  %p165_p7 = scmp.lt.s32.totalorder %s1227_s20, 3 }
  0x10   : > { %s1518_s25 = scalar_select %p1312_p4, 1, 0 }
  0x11   : > { %s1519_s26 = scalar_select %p1317_p6, 1, 0 }
  0x12   : > { %p1322_p8 = pnand %p861_p5, %p165_p7  ;;  %s1229_s28 = smov [#allocation6]  }
  0x13   : > { %s177_s29 = sshll.u32 %s1229_s28, 4  ;;  %s1230_s5 = smov [#allocation8]   ;;  %s178_s29 = int_to_ptr.vmem [resolvable:$true] %s177_s29 }
  0x14   : > { %p947_p9 = pneg %p1322_p8  ;;  %s190_s6 = sshll.u32 %s1230_s5, 4  ;;  %s191_s6 = int_to_ptr.vmem [resolvable:$true] %s190_s6 }
  0x15   : > { %s1044_s7 = scalar_lea.vmem %s178_s29, 1024  ;;  %p1052_p5 = scmp.lt.s32.totalorder %s178_s29, %s178_s29 }
  0x16   : > { %p1331_p11 = pnand %p947_p9, %p1302_p1  ;;  %p1045_p13 = scmp.ne.s32.totalorder %s178_s29, %s1044_s7 }
  0x17   : > { %p1053_p7 = scmp.lt.s32.totalorder %s1044_s7, %s1044_s7 }
  0x18   : > { %p1035_p12 = pneg %p1331_p11 }
  0x19   : > { %p1054_p10 = por %p1053_p7, %p1052_p5 }
  0x1a   : > { %p1047_p0 = pnand %p1045_p13, %p1035_p12 }
  0x1c   : > { %p1048_p3 = pneg %p1047_p0 }
  0x1e   : > { %p1055_p9 = pnand %p1054_p10, %p1048_p3 }
  0x20   : > { %1058 = shalt.err (!%p1055_p9)
}
  0x21   : > { %s1231_s8 = smov 256   ;;  %s1232_s9 = smov 16  }
  0x22   : > { %s1522_s1 = sld [smem:[#allocation16_spill]]  ;;  %s1070_s12 = scalar_lea.vmem %s191_s6, 1024 }
  0x23   : > { %p1071_p6 = scmp.ne.s32.totalorder %s191_s6, %s1070_s12  ;;  %p1078_p1 = scmp.lt.s32.totalorder %s191_s6, %s191_s6 }
  0x24   : > { %p1079_p4 = scmp.lt.s32.totalorder %s1070_s12, %s1070_s12 }
  0x25   : > { %p1073_p13 = pnand %p1071_p6, %p1035_p12 }
  0x26   : > { %p1080_p5 = por %p1079_p4, %p1078_p1 }
  0x27   : > { %p1074_p0 = pneg %p1073_p13 }
  0x28   : > { %950 = dma.hbm_to_vmem [thread:$0]  (!%p1331_p11), %s1522_s1, 1024, %s178_s29, [#allocation7], %s1231_s8, %s1231_s8, %s1232_s9  }
  0x29   : > { %p1081_p10 = pnand %p1080_p5, %p1074_p0 }
  0x2b   : > { %1084 = shalt.err (!%p1081_p10)
}
  0x2c   : > { %s1233_s13 = smov 128   ;;  %s1234_s14 = smov 8  }
  0x2d   : > { %953 = dma.hbm_to_vmem [thread:$0]  (!%p1331_p11), %s1509_s2, 1024, %s191_s6, [#allocation7], %s1233_s13, %s1233_s13, %s1234_s14  }
  0x2e   : > { %s1235_s28 = smov [#allocation9]  }
  0x2f   : > { %s204_s29 = sshll.u32 %s1235_s28, 4  ;;  %s205_s29 = int_to_ptr.vmem [resolvable:$true] %s204_s29 }
  0x30   : > { %s1096_s5 = scalar_lea.vmem %s205_s29, 128  ;;  %p1104_p4 = scmp.lt.s32.totalorder %s205_s29, %s205_s29 }
  0x31   : > { %p1097_p6 = scmp.ne.s32.totalorder %s205_s29, %s1096_s5  ;;  %p1105_p7 = scmp.lt.s32.totalorder %s1096_s5, %s1096_s5 }
  0x33   : > { %p1099_p3 = pnand %p1097_p6, %p1035_p12  ;;  %p1106_p9 = por %p1105_p7, %p1104_p4 }
  0x35   : > { %p1100_p1 = pneg %p1099_p3 }
  0x37   : > { %p1107_p13 = pnand %p1106_p9, %p1100_p1 }
  0x39   : > { %1110 = shalt.err (!%p1107_p13)
}
  0x3a   : > { %956 = dma.hbm_to_vmem [thread:$0]  (!%p1331_p11), %s1510_s3, 128, %s205_s29, [#allocation10]  }
  0x3b   : > { %s41_s6 = sadd.s32 1, %s1223_s19  ;;  %s50_s9 = sadd.s32 1, %s1215_s17 }
  0x3c   : > { %p43_p12 = scmp.ge.s32.totalorder %s41_s6, 2  ;;  %p57_p0 = scmp.ne.s32.totalorder %s1215_s17, %s1211_s16 }
  0x3d   : > { %p58_p5 = scmp.eq.s32.totalorder %s1227_s20, 0  ;;  %p968_p11 = scmp.lt.s32.totalorder %s1227_s20, 2 }
  0x3e   : > { %s1536_s6 = smov (%p43_p12, %s41_s6), 0  ;;  %p1374_p6 = por %p1306_p2, %p57_p0 }
  0x3f   : > { %p1368_p10 = por %p58_p5, %p57_p0  ;;  %s45_s11 = ssub.s32 %s1223_s19, %s1536_s6 }
  0x40   : > { %p48_p3 = scmp.eq.s32.totalorder %s45_s11, 0  ;;  %s215_s12 = sand.u32 1, %s1215_s17  }
  0x41   : > { %s866_s13 = sshll.u32 %s215_s12, 3  ;;  %s867_s21 = sshll.u32 %s1223_s19, 7 }
  0x42   : > { %s1383_s14 = scalar_select %p48_p3, %s1215_s17, %s50_s9  }
  0x43   : > { %s225_s29 = scalar_lea.hbm %s1507_s0, %s867_s21  ;;  %s219_s5 = scalar_lea.vmem [#allocation3], %s866_s13 }
  0x44   : > { %s227_s7 = sshll.u32 %s219_s5, 4  ;;  %p1391_p2 = pnand %p968_p11, %p1368_p10  ;;  %s228_s7 = int_to_ptr.vmem [resolvable:$true] %s227_s7 }
  0x45   : > { %s216_s8 = scalar_lea.sflag [#allocation4], %s215_s12  ;;  %s1124_s11 = scalar_lea.vmem %s228_s7, 128 }
  0x46   : > { %p1113_p1 = pneg %p1391_p2  ;;  %p1125_p4 = scmp.ne.s32.totalorder %s228_s7, %s1124_s11 }
  0x47   : > { %s1236_s9 = smov [#allocation3]  }
  0x48   : > { %p1127_p7 = pnand %p1125_p4, %p1113_p1  ;;  %s1129_s1 = sshll.u32 %s1236_s9, 4  ;;  %s1130_s1 = int_to_ptr.vmem [resolvable:$false] %s1129_s1 }
  0x49   : > { %s1131_s21 = scalar_lea.vmem %s1130_s1, 256  ;;  %p1132_p13 = scmp.lt.s32.totalorder %s228_s7, %s1130_s1 }
  0x4a   : > { %p1128_p9 = pneg %p1127_p7  ;;  %p1133_p12 = scmp.lt.s32.totalorder %s1131_s21, %s1124_s11 }
  0x4c   : > { %p1134_p0 = por %p1133_p12, %p1132_p13 }
  0x4e   : > { %p1135_p5 = pnand %p1134_p0, %p1128_p9 }
  0x50   : > { %1138 = shalt.err (!%p1135_p5)
}
  0x51   : > { %960 = dma.hbm_to_vmem [thread:$0]  (!%p1391_p2), %s225_s29, 128, %s228_s7, %s216_s8  }
  0x52   : > { %236 = sbr.rel (%p1322_p8) target bundleno = 1061 (0x425), region = 36  ;;  %s1402_s30 = sand.u32 (!%p1322_p8), 1, %s1211_s16  }
  0x53   : > { %s869_s12 = sshll.u32 (!%p1322_p8), %s1402_s30, 3  ;;  %s239_s13 = scalar_lea.sflag (!%p1322_p8), [#allocation4], %s1402_s30 }
  0x54   : > { %s242_s1 = scalar_lea.vmem (!%p1322_p8), [#allocation3], %s869_s12  ;;  %p1526_p10 = scmp.ne.s32.totalorder (!%p1322_p8), %s1518_s25, 0 }
  0x57   : > { %1190 = dma.done.wait (%p1526_p10), %s239_s13, 128  }
  0x58   : > { %1192 = vsyncadd (%p1526_p10), %s239_s13, 4294967168  ;;  %p1527_p11 = scmp.ne.s32.totalorder %s1516_s23, 0 }
  0x5a   : > { %1194 = dma.done.wait (%p1527_p11), [#allocation7], 2048  }
  0x5b   : > { %1196 = vsyncadd (%p1527_p11), [#allocation7], 4294965248 }
  0x5c   : > { %1198 = dma.done.wait (%p1527_p11), [#allocation10], 128  }
  0x5d   : > { %1200 = vsyncadd (%p1527_p11), [#allocation10], 4294967168  ;;  %v1237_v0 = vmov 0.0   ;;  %v296_v1 = vld [vmem:[#allocation6 + $0x38] sm:$0xff]  ;;  %v295_v2 = vld [vmem:[#allocation6 + $0x30] sm:$0xff]  ;;  %vm297_vm0 = vcmask 261120  }
  0x5e   : > { %365 = vmatprep.mubr.f32.mxu0 %v1237_v0  ;;  %899 = vmatprep.subr.mxu1 %v1237_v0  ;;  %v294_v3 = vld [vmem:[#allocation6 + $0x28] sm:$0xff]  ;;  %v293_v4 = vld [vmem:[#allocation6 + $0x20] sm:$0xff]  ;;  %v292_v5 = vld [vmem:[#allocation6 + $0x18] sm:$0xff]  ;;  %s1238_s23 = smov 64   ;;  %s1239_s25 = smov 96   ;;  %vm1241_vm1 = vmmov 0  }
  0x5f   : > { %325 = vmatprep.subr.mxu0 %v296_v1  ;;  %v291_v6 = vld [vmem:[#allocation6 + $0x10] sm:$0xff]  ;;  %v290_v7 = vld [vmem:[#allocation6 + $0x8] sm:$0xff]  ;;  %v289_v8 = vld [vmem:[#allocation6] sm:$0xff]  ;;  %s1240_s27 = smov 32   ;;  %901 = vmatprep.mubr.msk.f32.mxu1 %vm1241_vm1, %v1237_v0  ;;  %vm285_vm2 = vcmask 253952   ;;  %vm407_vm3 = vcmask 64512  }
  0x60   : > { %326 = vmatpush1.msra.mxu0 %v295_v2  ;;  %v288_v9 = vld [vmem:[%s242_s1] sm:$0xff]  ;;  %286 = vst.msk [vmem:[#allocation2] sm:$0x1] %vm285_vm2, %v1237_v0  ;;  %287 = vst.msk [vmem:[#allocation2 + $0x1] sm:$0x1] %vm285_vm2, %v1237_v0  ;;  %v395_v22 = vld [vmem:[#allocation9] sm:$0xff] }
  0x61   : > { %327 = vmatprep.subr.mxu0 %v294_v3  ;;  %v584_v25 = vld [vmem:[#allocation8 + $0x38] sm:$0xff]  ;;  %v583_v27 = vld [vmem:[#allocation8 + $0x30] sm:$0xff]  ;;  %v582_v29 = vld [vmem:[#allocation8 + $0x28] sm:$0xff]  ;;  %vm563_vm4 = vcmask 261127   ;;  %s882_s22 = sshll.u32 %s1219_s18, 7  ;;  %s278_s28 = scalar_lea.vmem [#allocation11], %s869_s12 }
  0x62   : > { %328 = vmatpush1.msra.mxu0 %v293_v4  ;;  %v579_v26 = vld [vmem:[#allocation8 + $0x18] sm:$0xff]  ;;  %v578_v28 = vld [vmem:[#allocation8 + $0x10] sm:$0xff]  ;;  %v577_v30 = vld [vmem:[#allocation8 + $0x8] sm:$0xff]  ;;  %s747_s29 = sshll.u32 %s278_s28, 4  ;;  %s1458_s24 = scalar_lea.hbm %s1511_s4, %s882_s22  ;;  %s1460_s29 = int_to_ptr.vmem [resolvable:$true] %s747_s29 }
  0x63   : > { %329 = vmatprep.subr.mxu0 %v292_v5  ;;  %v581_v31 = vld [vmem:[#allocation8 + $0x20] sm:$0xff]  ;;  %s733_s18 = scalar_lea.sflag [#allocation5], %s1402_s30  ;;  %s1139_s8 = scalar_lea.vmem %s1460_s29, 128 }
  0x64   : > { %330 = vmatpush1.msra.mxu0 %v291_v6  ;;  %v576_v32 = vld [vmem:[#allocation8] sm:$0xff]  ;;  %p1140_p8 = scmp.ne.s32.totalorder %s1460_s29, %s1139_s8  ;;  %s1242_s11 = smov [#allocation11]  }
  0x65   : > { %331 = vmatprep.subr.mxu0 %v290_v7  ;;  %s1143_s9 = sshll.u32 %s1242_s11, 4  ;;  %s1144_s9 = int_to_ptr.vmem [resolvable:$false] %s1143_s9 }
  0x66   : > { %332 = vmatpush1.msra.mxu0 %v289_v8  ;;  %p1141_p3 = pnand %p1140_p8, %p1374_p6  ;;  %s1145_s21 = scalar_lea.vmem %s1144_s9, 256 }
  0x67   : > { %874 = vmatmul.mubr.msk.f32.vlgmr.msra.gmra.mxu0 %vm297_vm0, %v288_v9  ;;  %920 = vmatprep.subr.mxu0 %v1237_v0  ;;  %v875_v33 = vld [vmem:[#allocation2] ss:$0 sm:$0xff]  ;;  %v877_v37 = vld [vmem:[#allocation2 + $0x1] ss:$0 sm:$0xff]  ;;  %p1146_p1 = scmp.lt.s32.totalorder %s1460_s29, %s1144_s9  ;;  %p1147_p4 = scmp.lt.s32.totalorder %s1145_s21, %s1139_s8 }
  0x68   : > { %928 = vmatprep.mubr.msk.f32.mxu0 %vm1241_vm1, %v1237_v0  ;;  %921 = vmatpush3.msra.mxu0 %v579_v26  ;;  %p1142_p2 = pneg %p1141_p3 }
  0x69   : > { %922 = vmatprep.subr.mxu0 %v1237_v0  ;;  %p1148_p7 = por %p1147_p4, %p1146_p1 }
  0x6a   : > { %923 = vmatpush3.msra.mxu0 %v578_v28 }
  0x6b   : > { %924 = vmatprep.subr.mxu0 %v1237_v0  ;;  %p1149_p9 = pnand %p1148_p7, %p1142_p2 }
  0x6c   : > { %925 = vmatpush3.msra.mxu0 %v577_v30 }
  0x6d   : > { %926 = vmatprep.subr.mxu0 %v1237_v0 }
  0x6e   : > { %927 = vmatpush3.msra.mxu0 %v576_v32 }
 0x127   : > { %v1424_v10 = vpop.f32.mrf.mxu0 }
 0x129   : > { %v369_v11 = vpop.f32.mrf.mxu0 }
 0x12a   : > { %373 = vrot.lane.b32.xlu0 %v369_v11, %s1238_s23 }
 0x12e   : > { %386 = vrot.lane.b32.xlu0 %v369_v11, %s1239_s25 }
 0x19c   : > { %v374_v12 = vpop.permute.xlu0 %373 }
 0x19d   : > { %v376_v13 = vmul.f32 %v374_v12, %v1424_v10 }
 0x19f   : > { %378 = vrot.lane.b32.xlu1 %v376_v13, %s1239_s25 }
 0x1a0   : > { %v387_v14 = vpop.permute.xlu0 %386 }
 0x1a1   : > { %v389_v15 = vmul.f32 %v387_v14, %v1424_v10 }
 0x1a3   : > { %382 = vrot.lane.b32.xlu1 %v369_v11, %s1240_s27  ;;  %391 = vrot.lane.b32.xlu0 %v389_v15, %s1239_s25 }
 0x211   : > { %v379_v16 = vpop.permute.xlu1 %378 }
 0x212   : > { %v381_v17 = vsub.f32 %v376_v13, %v379_v16 }
 0x214   : > { %404 = vrot.lane.b32.xlu1 %v381_v17, %s1238_s23 }
 0x215   : > { %v383_v18 = vpop.permute.xlu1 %382  ;;  %v392_v20 = vpop.permute.xlu0 %391 }
 0x216   : > { %v385_v19 = vmul.f32 %v383_v18, %v1424_v10 }
 0x218   : > { %v394_v21 = vadd.f32 %v392_v20, %v385_v19  ;;  %568 = vrot.lane.b32.xlu1 %v1424_v10, %s1239_s25 }
 0x21a   : > { %490 = vrot.lane.b32.xlu0 %v394_v21, %s1238_s23 }
 0x286   : > { %v405_v23 = vpop.permute.xlu1 %404 }
 0x287   : > { %900 = vmatpush3.msra.mxu1 %v405_v23 }
 0x288   : > { %902 = vmatmul.mubr.msk.f32.vlgmr.msra.gmra.mxu1 %vm407_vm3, %v395_v22  ;;  %904 = vmatprep.subr.mxu1 %v1237_v0 }
 0x289   : > { %906 = vmatprep.mubr.msk.f32.mxu1 %vm1241_vm1, %v1237_v0 }
 0x28a   : > { %v569_v40 = vpop.permute.xlu1 %568 }
 0x28c   : > { %v491_v24 = vpop.permute.xlu0 %490 }
 0x28d   : > { %905 = vmatpush3.msra.mxu1 %v491_v24 }
 0x28e   : > { %907 = vmatmul.mubr.msk.f32.vlgmr.msra.gmra.mxu1 %vm407_vm3, %v395_v22  ;;  %909 = vmatprep.subr.mxu1 %v1237_v0 }
 0x28f   : > { %917 = vmatprep.mubr.msk.f32.mxu1 %vm1241_vm1, %v1237_v0  ;;  %910 = vmatpush3.msra.mxu1 %v584_v25 }
 0x290   : > { %911 = vmatprep.subr.mxu1 %v1237_v0 }
 0x291   : > { %912 = vmatpush3.msra.mxu1 %v583_v27 }
 0x292   : > { %913 = vmatprep.subr.mxu1 %v1237_v0 }
 0x293   : > { %914 = vmatpush3.msra.mxu1 %v582_v29 }
 0x294   : > { %915 = vmatprep.subr.mxu1 %v1237_v0 }
 0x295   : > { %916 = vmatpush3.msra.mxu1 %v581_v31 }
 0x348   : > { %v477_v34 = vpop.f32.mrf.mxu1 }
 0x349   : > { %v478_v35 = vadd.f32 %v875_v33, %v477_v34 }
 0x34a   : > { %v903_v36 = vpop.f32.mrf.mxu1 }
 0x34b   : > { %564 = vst.msk [vmem:[#allocation2 - $0x7] sm:$0x80] %vm563_vm4, %v478_v35  ;;  %v566_v42 = vmul.f32 %v478_v35, %v1424_v10  ;;  %v574_v43 = vmul.f32 %v569_v40, %v478_v35 }
 0x34e   : > { %v559_v38 = vpop.f32.mrf.mxu1 }
 0x34f   : > { %v560_v39 = vadd.f32 %v877_v37, %v559_v38 }
 0x350   : > { %v908_v41 = vpop.f32.mrf.mxu1 }
 0x351   : > { %565 = vst.msk [vmem:[#allocation2 - $0x6] sm:$0x80] %vm563_vm4, %v560_v39  ;;  %v571_v44 = vmul.f32 %v569_v40, %v560_v39  ;;  %v573_v45 = vmul.f32 %v560_v39, %v1424_v10 }
 0x353   : > { %v572_v46 = vadd.f32 %v571_v44, %v566_v42  ;;  %v575_v47 = vsub.f32 %v573_v45, %v574_v43 }
 0x355   : > { %918 = vmatmul.mubr.msk.f32.vlgmr.msra.gmra.mxu1 %vm297_vm0, %v575_v47  ;;  %929 = vmatmul.mubr.msk.f32.vlgmr.msra.gmra.mxu0 %vm297_vm0, %v572_v46 }
 0x415   : > { %v654_v48 = vpop.f32.mrf.mxu1  ;;  %v727_v49 = vpop.f32.mrf.mxu0 }
 0x416   : > { %v728_v50 = vadd.f32 %v727_v49, %v654_v48 }
 0x417   : > { %v919_v51 = vpop.f32.mrf.mxu1  ;;  %v930_v52 = vpop.f32.mrf.mxu0 }
 0x418   : > { %731 = vst.msk [vmem:[%s278_s28] sm:$0xff] %vm297_vm0, %v728_v50 }
 0x419   : > { %1152 = shalt.err (!%p1149_p9)
}
 0x41a   : > { %s1153_s12 = scalar_lea.hbm %s1458_s24, 128  ;;  %s1157_s1 = scalar_lea.hbm %s1511_s4, 256 }
 0x41b   : > { %p1154_p13 = scmp.ne.s32.totalorder %s1458_s24, %s1153_s12  ;;  %p1158_p5 = scmp.lt.s32.totalorder %s1458_s24, %s1511_s4 }
 0x41c   : > { %p1159_p10 = scmp.lt.s32.totalorder %s1157_s1, %s1153_s12 }
 0x41d   : > { %p1155_p12 = pnand %p1154_p13, %p1374_p6 }
 0x41e   : > { %p1160_p11 = por %p1159_p10, %p1158_p5 }
 0x41f   : > { %p1156_p0 = pneg %p1155_p12 }
 0x421   : > { %p1161_p8 = pnand %p1160_p11, %p1156_p0 }
 0x423   : > { %1164 = shalt.err (!%p1161_p8)
}
 0x424   : > { %945 = dma.vmem_to_hbm [thread:$0]  (%p1374_p6), %s1460_s29, 128, %s1458_s24, %s733_s18  }
 0x425 PF: > { %s759_s27 = sand.u32 1, %s1207_s15   ;;  %p1528_p3 = scmp.ne.s32.totalorder %s1519_s26, 0 }
 0x426   : > { %p1529_p2 = scmp.ge.s32.totalorder %s1227_s20, 2  ;;  %s760_s22 = scalar_lea.sflag [#allocation5], %s759_s27 }
 0x428   : > { %p962_p1 = pnand %p1529_p2, %p1528_p3 }
 0x42a   : > { %p963_p4 = pneg %p962_p1 }
 0x42c   : > { %1202 = dma.done.wait (%p963_p4), %s760_s22, 128  }
 0x42d   : > { %1204 = vsyncadd (%p963_p4), %s760_s22, 4294967168  ;;  %s22_s20 = sadd.s32 1, %s1227_s20   ;;  %s1530_s15 = smov %s1211_s16 }
 0x42e   : > { %p19_p7 = scmp.ge.s32.totalorder %s22_s20, 4   ;;  %s1531_s16 = smov %s1215_s17 }
 0x42f   : > { %s1532_s17 = smov %s1383_s14  ;;  %s1533_s18 = smov %s1223_s19 }
 0x430   : > { %s1534_s19 = smov %s1536_s6  ;;  %21 = sbr.rel (!%p19_p7) target bundleno = 10 (0xa), region = 99 }
 0x435   :  { %765 = vsyncpa [#allocation4], 1 }
 0x436   :  { %767 = vsyncpa [#allocation4 + $0x1], 1 }
 0x437   :  { %768 = vsyncpa [#allocation7], 1 }
 0x438   :  { %769 = vsyncpa [#allocation10], 1 }
 0x439   :  { %770 = vsyncpa [#allocation5], 1 }
 0x43a   :  { %772 = vsyncpa [#allocation5 + $0x1], 1 }

</bundles_post_ra>
